<compile_context>
chip_gen: v6e
topology: v6e:2x2x1
jax: 0.10.0
libtpu: 0.0.40
codegen_flags: <defaults>
</compile_context>

<pallas_src>
import functools

import jax
import jax.numpy as jnp
from jax.experimental import pallas as pl
from jax.experimental.pallas import tpu as pltpu


TEMPERATURE = 0.1


def _round_up(x, m):
    return (x + m - 1) // m * m


# ---------------------------------------------------------------------------
# Kernel
# ---------------------------------------------------------------------------
def _consistency_kernel(ol_ref, al_ref, of_ref, af_ref, op_ref, ap_ref, out_ref, *,
                        inv_temperature, inv_batch, inv_bf, inv_bh,
                        batch, tiles_per_core, need_mask):
    """Accumulate weighted per-element contributions into a resident (1,8,128) f32
    output block (one per core).  Final scalar reduce happens in the wrapper."""
    i = pl.program_id(1)                       # reduction axis (batch tiles)

    @pl.when(i == 0)
    def _init():
        out_ref[...] = jnp.zeros_like(out_ref)

    tb = ol_ref.shape[0]
    f32 = jnp.float32

    if need_mask:
        c = pl.program_id(0)
        tile_idx = c * tiles_per_core + i      # un-clamped tile index
        row0 = tile_idx * tb
        rows = row0 + jax.lax.broadcasted_iota(jnp.int32, (tb, 1), 0)
        valid = rows < batch                   # (tb, 1): False on tail / overflow rows

        def maskv(x):
            return jnp.where(valid, x, 0.0)
    else:
        def maskv(x):
            return x

    def fold_add(x):
        # x: (tb, w) f32.  Fold row-groups of 8 with pure VPU adds (the reshape keeps
        # the (8, lanes) minor tile, so it is relayout-free) and accumulate into the
        # resident (8,128) output block.  No per-step cross-lane reduce.
        w = x.shape[1]
        for j in range(0, w, 128):
            cw = min(128, w - j)
            part = jnp.sum(x[:, j:j + cw].reshape(tb // 8, 8, cw), axis=0)   # (8, cw)
            out_ref[0, :, :cw] += part

    # ---- KL(p || q) / batch : fused log-softmax with exp reuse -------------------
    # Masked (garbage) rows become all-zero logits -> logp == logq -> exactly 0.
    ol = maskv(ol_ref[...].astype(f32)) * inv_temperature
    al = maskv(al_ref[...].astype(f32)) * inv_temperature

    so = ol - jnp.max(ol, axis=-1, keepdims=True)
    eo = jnp.exp(so)
    seo = jnp.sum(eo, axis=-1, keepdims=True)
    sa = al - jnp.max(al, axis=-1, keepdims=True)
    ea = jnp.exp(sa)
    sea = jnp.sum(ea, axis=-1, keepdims=True)

    p = eo * (1.0 / seo)                       # exact per-row reciprocal; no 2nd exp pass
    # p underflowing to 0 with finite (logp - logq) matches F.kl_div's zero-target rule.
    log_ratio = (so - jnp.log(seo)) - (sa - jnp.log(sea))    # logp - logq, always finite
    fold_add(p * log_ratio * inv_batch)

    # ---- family / pooled-feature MSE (native-dtype inputs, f32 math) -------------
    df = maskv(of_ref[...].astype(f32) - af_ref[...].astype(f32))
    fold_add(df * df * inv_bf)
    dp = maskv(op_ref[...].astype(f32) - ap_ref[...].astype(f32))
    fold_add(dp * dp * inv_bh)


# ---------------------------------------------------------------------------
# Wrapper helpers
# ---------------------------------------------------------------------------
@functools.lru_cache(maxsize=None)
def _vmem_budget_and_limit():
    try:
        cap = int(pltpu.get_tpu_info().vmem_capacity_bytes)
    except Exception:
        cap = 64 * 1024 * 1024                 # conservative fallback (v7x physical)
    # ~48 MiB on 128-MiB chips (v5e/v6e), ~24 MiB on 64-MiB v7x.
    budget = max(12 << 20, min(48 << 20, (cap * 3) // 8))
    limit = int(min(cap, budget + budget // 2))
    return int(budget), limit


def _pick_batch_tile(batch, ol, of, op, vmem_budget):
    """Largest multiple-of-8 batch tile whose full working set fits the VMEM budget."""
    cp = _round_up(ol.shape[1], 128)
    fp = _round_up(of.shape[1], 128)
    hp = _round_up(op.shape[1], 128)
    # Streamed inputs: orig+adv (x2), double-buffered by the pipeline (x2), native dtype.
    stream_row = 2 * 2 * (cp * ol.dtype.itemsize
                          + fp * of.dtype.itemsize
                          + hp * op.dtype.itemsize)
    # Live f32 intermediates at 128-padded lane width (~6x logits tile, ~2x each MSE tile).
    interm_row = 4 * (6 * cp + 2 * fp + 2 * hp)
    row_bytes = stream_row + interm_row
    tb = vmem_budget // row_bytes
    tb = max(8, min(2048, (tb // 8) * 8))
    return int(min(tb, _round_up(batch, 8)))


def _fused_reference(original_outputs, adversarial_outputs, temperature=TEMPERATURE):
    """Pure-JAX fused expression (also used as the small-input fast path)."""
    logp = jax.nn.log_softmax(
        original_outputs["detection_logits"].astype(jnp.float32) / temperature, axis=-1)
    logq = jax.nn.log_softmax(
        adversarial_outputs["detection_logits"].astype(jnp.float32) / temperature, axis=-1)
    p = jnp.exp(logp)
    kl = jnp.sum(p * (logp - logq)) / p.shape[0]
    fam = jnp.mean((original_outputs["family_predictions"].astype(jnp.float32)
                    - adversarial_outputs["family_predictions"].astype(jnp.float32)) ** 2)
    feat = jnp.mean((original_outputs["pooled_features"].astype(jnp.float32)
                     - adversarial_outputs["pooled_features"].astype(jnp.float32)) ** 2)
    return kl + fam + feat


# ---------------------------------------------------------------------------
# Public entry point (matches ConsistencyRegularizer.forward)
# ---------------------------------------------------------------------------
def consistency_regularizer(original_outputs, adversarial_outputs,
                            temperature=TEMPERATURE, use_pallas=None, tile_batch=None):
    ol = original_outputs["detection_logits"]
    al = adversarial_outputs["detection_logits"]
    of = original_outputs["family_predictions"]
    af = adversarial_outputs["family_predictions"]
    op = original_outputs["pooled_features"]
    ap = adversarial_outputs["pooled_features"]

    assert ol.ndim == 2 and of.ndim == 2 and op.ndim == 2
    batch = ol.shape[0]
    assert al.shape == ol.shape and af.shape == of.shape and ap.shape == op.shape
    assert of.shape[0] == batch and op.shape[0] == batch

    streamed_bytes = sum(int(x.size) * x.dtype.itemsize for x in (ol, al, of, af, op, ap))
    if use_pallas is None:
        # Below a few MB the fixed pallas_call + per-step overhead loses to fused XLA.
        use_pallas = streamed_bytes >= (2 << 20)
    if (not use_pallas) or batch < 8:
        return _fused_reference(original_outputs, adversarial_outputs, temperature)

    n_classes, n_family, n_hidden = ol.shape[1], of.shape[1], op.shape[1]

    budget, vmem_limit = _vmem_budget_and_limit()
    tb = int(tile_batch) if tile_batch is not None else _pick_batch_tile(batch, ol, of, op, budget)
    tb = max(8, _round_up(tb, 8))

    total_tiles = pl.cdiv(batch, tb)
    # Split the reduction over 2 TensorCores (v7x megacore) when it costs at most a
    # small fraction of wasted work on single-TC chips (v5e/v6e run it sequentially).
    nc = 2 if ((total_tiles % 2 == 0 and total_tiles >= 2) or total_tiles >= 9) else 1
    tiles_per_core = pl.cdiv(total_tiles, nc)

    exact_split = (nc * tiles_per_core == total_tiles)
    need_mask = (batch % tb != 0) or (not exact_split)

    if exact_split:
        def idx(c, i):
            return (c * tiles_per_core + i, 0)
    else:
        last = total_tiles - 1

        def idx(c, i):
            # Clamp overflow slots onto the last valid tile; the kernel's row mask
            # zeroes their contribution (never rely on OOB block contents).
            return (jnp.minimum(c * tiles_per_core + i, last), 0)

    kernel = functools.partial(
        _consistency_kernel,
        inv_temperature=float(1.0 / temperature),
        inv_batch=float(1.0 / batch),
        inv_bf=float(1.0 / (batch * n_family)),
        inv_bh=float(1.0 / (batch * n_hidden)),
        batch=int(batch),
        tiles_per_core=int(tiles_per_core),
        need_mask=bool(need_mask),
    )

    grid_spec = pltpu.PrefetchScalarGridSpec(
        num_scalar_prefetch=0,
        grid=(nc, tiles_per_core),
        in_specs=[
            pl.BlockSpec((tb, n_classes), idx),   # orig logits
            pl.BlockSpec((tb, n_classes), idx),   # adv  logits
            pl.BlockSpec((tb, n_family), idx),    # orig family
            pl.BlockSpec((tb, n_family), idx),    # adv  family
            pl.BlockSpec((tb, n_hidden), idx),    # orig pooled
            pl.BlockSpec((tb, n_hidden), idx),    # adv  pooled
        ],
        # Per-core partial-sum block, resident across the reduction axis.
        out_specs=pl.BlockSpec((1, 8, 128), lambda c, i: (c, 0, 0)),
    )

    cost = pl.CostEstimate(
        flops=int(8 * batch * n_classes + 4 * batch * (n_family + n_hidden)),
        transcendentals=int(2 * batch * n_classes + 3 * batch),
        bytes_accessed=int(streamed_bytes + nc * 8 * 128 * 4),
    )

    partials = pl.pallas_call(
        kernel,
        out_shape=jax.ShapeDtypeStruct((nc, 8, 128), jnp.float32),
        grid_spec=grid_spec,
        compiler_params=pltpu.CompilerParams(
            dimension_semantics=("parallel", "arbitrary"),
            vmem_limit_bytes=vmem_limit,
        ),
        cost_estimate=cost,
    )(ol, al, of, af, op, ap)

    # Single cross-lane/cross-sublane/cross-core reduce, outside the kernel.
    return jnp.sum(partials)


# ---------------------------------------------------------------------------
# Self-test
# ---------------------------------------------------------------------------
if __name__ == "__main__":
    def make_inputs(key, batch, n_classes, n_family, n_hidden):
        ks = jax.random.split(key, 6)
        orig = {
            "detection_logits": jax.random.normal(ks[0], (batch, n_classes), jnp.float32),
            "family_predictions": jax.random.normal(ks[1], (batch, n_family), jnp.float32),
            "pooled_features": jax.random.normal(ks[2], (batch, n_hidden), jnp.float32),
        }
        adv = {
            "detection_logits": orig["detection_logits"]
            + 0.1 * jax.random.normal(ks[3], (batch, n_classes), jnp.float32),
            "family_predictions": orig["family_predictions"]
            + 0.1 * jax.random.normal(ks[4], (batch, n_family), jnp.float32),
            "pooled_features": orig["pooled_features"]
            + 0.1 * jax.random.normal(ks[5], (batch, n_hidden), jnp.float32),
        }
        return orig, adv

    def check(orig, adv, **kw):
        got = jax.block_until_ready(consistency_regularizer(orig, adv, **kw))
        ref = jax.block_until_ready(_fused_reference(orig, adv))
        assert jnp.allclose(got, ref, rtol=1e-4, atol=1e-5), (got, ref)

    key = jax.random.PRNGKey(0)
    k1, k2, k3, k4 = jax.random.split(key, 4)

    # 1) Tiny inputs consistent with the module (batch=2): takes the fused-XLA fast path.
    check(*make_inputs(k1, batch=2, n_classes=8, n_family=16, n_hidden=32))

    # 2) Pallas path, even 2-way core split, exact tiles (no masking): grid (2, 1).
    check(*make_inputs(k2, batch=16, n_classes=8, n_family=16, n_hidden=32),
          use_pallas=True, tile_batch=8)

    # 3) Pallas path, single-core grid, auto tile size (single tile, no masking).
    check(*make_inputs(k3, batch=64, n_classes=8, n_family=16, n_hidden=32),
          use_pallas=True)

    # 4) Pallas path, odd tile count + ragged tail: 11 tiles -> grid (2, 6); exercises
    #    the index-map clamp and the in-kernel row mask.
    check(*make_inputs(k4, batch=84, n_classes=8, n_family=16, n_hidden=32),
          use_pallas=True, tile_batch=8)

    print("KERNEL_OK")
</pallas_src>

<mosaic_0001>
module attributes {stable_mosaic.version = 11 : i64} {
  func.func @_consistency_kernel(%arg0: i32, %arg1: i32, %arg2: memref<8x8xf32, #tpu.memory_space<vmem>>, %arg3: memref<8x8xf32, #tpu.memory_space<vmem>>, %arg4: memref<8x16xf32, #tpu.memory_space<vmem>>, %arg5: memref<8x16xf32, #tpu.memory_space<vmem>>, %arg6: memref<8x32xf32, #tpu.memory_space<vmem>>, %arg7: memref<8x32xf32, #tpu.memory_space<vmem>>, %arg8: memref<1x8x128xf32, #tpu.memory_space<vmem>>) attributes {dimension_semantics = [#tpu.dimension_semantics<parallel>, #tpu.dimension_semantics<arbitrary>], iteration_bounds = array<i64: 2, 1>, scalar_prefetch = 0 : i64, scratch_operands = 0 : i64, tpu.core_type = #tpu.core_type<tc>, window_params = [{transform_indices = @transform_0, window_bounds = array<i64: 8, 8>}, {transform_indices = @transform_1, window_bounds = array<i64: 8, 8>}, {transform_indices = @transform_2, window_bounds = array<i64: 8, 16>}, {transform_indices = @transform_3, window_bounds = array<i64: 8, 16>}, {transform_indices = @transform_4, window_bounds = array<i64: 8, 32>}, {transform_indices = @transform_5, window_bounds = array<i64: 8, 32>}, {transform_indices = @transform_6, window_bounds = array<i64: 1, 8, 128>}]} {
    %c0_i32 = arith.constant 0 : i32
    %0 = arith.cmpi eq, %arg1, %c0_i32 : i32
    %1 = arith.extui %0 : i1 to i32
    %c0_i32_0 = arith.constant 0 : i32
    %2 = arith.cmpi ne, %1, %c0_i32_0 : i32
    scf.if %2 {
      %cst_42 = arith.constant 0.000000e+00 : f32
      %73 = vector.broadcast %cst_42 : f32 to vector<1x8x128xf32>
      %c0_43 = arith.constant 0 : index
      %c0_44 = arith.constant 0 : index
      %c0_45 = arith.constant 0 : index
      %74 = vector.load %arg8[%c0_43, %c0_44, %c0_45] : memref<1x8x128xf32, #tpu.memory_space<vmem>>, vector<1x8x128xf32>
      tpu.vector_store %arg8[%c0_43, %c0_44, %c0_45], %73 {strides = array<i32>} : memref<1x8x128xf32, #tpu.memory_space<vmem>>, vector<1x8x128xf32>,
    } else {
    }
    %c0 = arith.constant 0 : index
    %c0_1 = arith.constant 0 : index
    %3 = vector.load %arg2[%c0, %c0_1] : memref<8x8xf32, #tpu.memory_space<vmem>>, vector<8x8xf32>
    %cst = arith.constant 1.000000e+01 : f32
    %4 = vector.broadcast %cst : f32 to vector<8x8xf32>
    %5 = arith.mulf %3, %4 : vector<8x8xf32>
    %c0_2 = arith.constant 0 : index
    %c0_3 = arith.constant 0 : index
    %6 = vector.load %arg3[%c0_2, %c0_3] : memref<8x8xf32, #tpu.memory_space<vmem>>, vector<8x8xf32>
    %cst_4 = arith.constant 1.000000e+01 : f32
    %7 = vector.broadcast %cst_4 : f32 to vector<8x8xf32>
    %8 = arith.mulf %6, %7 : vector<8x8xf32>
    %cst_5 = arith.constant dense<0xFF800000> : vector<8xf32>
    %9 = vector.multi_reduction <maximumf>, %5, %cst_5 [1] : vector<8x8xf32> to vector<8xf32>
    %10 = vector.shape_cast %9 : vector<8xf32> to vector<8x1xf32>
    %11 = vector.broadcast %10 : vector<8x1xf32> to vector<8x8xf32>
    %12 = arith.subf %5, %11 : vector<8x8xf32>
    %13 = math.exp %12 : vector<8x8xf32>
    %cst_6 = arith.constant dense<0.000000e+00> : vector<8xf32>
    %14 = vector.multi_reduction <add>, %13, %cst_6 [1] : vector<8x8xf32> to vector<8xf32>
    %15 = vector.shape_cast %14 : vector<8xf32> to vector<8x1xf32>
    %cst_7 = arith.constant dense<0xFF800000> : vector<8xf32>
    %16 = vector.multi_reduction <maximumf>, %8, %cst_7 [1] : vector<8x8xf32> to vector<8xf32>
    %17 = vector.shape_cast %16 : vector<8xf32> to vector<8x1xf32>
    %18 = vector.broadcast %17 : vector<8x1xf32> to vector<8x8xf32>
    %19 = arith.subf %8, %18 : vector<8x8xf32>
    %20 = math.exp %19 : vector<8x8xf32>
    %cst_8 = arith.constant dense<0.000000e+00> : vector<8xf32>
    %21 = vector.multi_reduction <add>, %20, %cst_8 [1] : vector<8x8xf32> to vector<8xf32>
    %22 = vector.shape_cast %21 : vector<8xf32> to vector<8x1xf32>
    %cst_9 = arith.constant 1.000000e+00 : f32
    %23 = vector.broadcast %cst_9 : f32 to vector<8x1xf32>
    %24 = arith.divf %23, %15 : vector<8x1xf32>
    %25 = vector.broadcast %24 : vector<8x1xf32> to vector<8x8xf32>
    %26 = arith.mulf %13, %25 : vector<8x8xf32>
    %27 = math.log %15 : vector<8x1xf32>
    %28 = vector.broadcast %27 : vector<8x1xf32> to vector<8x8xf32>
    %29 = arith.subf %12, %28 : vector<8x8xf32>
    %30 = math.log %22 : vector<8x1xf32>
    %31 = vector.broadcast %30 : vector<8x1xf32> to vector<8x8xf32>
    %32 = arith.subf %19, %31 : vector<8x8xf32>
    %33 = arith.subf %29, %32 : vector<8x8xf32>
    %34 = arith.mulf %26, %33 : vector<8x8xf32>
    %cst_10 = arith.constant 6.250000e-02 : f32
    %35 = vector.broadcast %cst_10 : f32 to vector<8x8xf32>
    %36 = arith.mulf %34, %35 : vector<8x8xf32>
    %37 = vector.shape_cast %36 : vector<8x8xf32> to vector<1x8x8xf32>
    %cst_11 = arith.constant dense<0.000000e+00> : vector<8x8xf32>
    %38 = vector.multi_reduction <add>, %37, %cst_11 [0] : vector<1x8x8xf32> to vector<8x8xf32>
    %c0_12 = arith.constant 0 : index
    %c0_13 = arith.constant 0 : index
    %c0_14 = arith.constant 0 : index
    %39 = vector.load %arg8[%c0_12, %c0_13, %c0_14] : memref<1x8x128xf32, #tpu.memory_space<vmem>>, vector<1x8x8xf32>
    %40 = vector.shape_cast %39 : vector<1x8x8xf32> to vector<8x8xf32>
    %41 = arith.addf %40, %38 : vector<8x8xf32>
    %c0_15 = arith.constant 0 : index
    %c0_16 = arith.constant 0 : index
    %c0_17 = arith.constant 0 : index
    %42 = vector.load %arg8[%c0_15, %c0_16, %c0_17] : memref<1x8x128xf32, #tpu.memory_space<vmem>>, vector<1x8x8xf32>
    %43 = vector.shape_cast %42 : vector<1x8x8xf32> to vector<8x8xf32>
    %44 = vector.shape_cast %41 : vector<8x8xf32> to vector<1x8x8xf32>
    tpu.vector_store %arg8[%c0_15, %c0_16, %c0_17], %44 {strides = array<i32>} : memref<1x8x128xf32, #tpu.memory_space<vmem>>, vector<1x8x8xf32>,
    %c0_18 = arith.constant 0 : index
    %c0_19 = arith.constant 0 : index
    %45 = vector.load %arg4[%c0_18, %c0_19] : memref<8x16xf32, #tpu.memory_space<vmem>>, vector<8x16xf32>
    %c0_20 = arith.constant 0 : index
    %c0_21 = arith.constant 0 : index
    %46 = vector.load %arg5[%c0_20, %c0_21] : memref<8x16xf32, #tpu.memory_space<vmem>>, vector<8x16xf32>
    %47 = arith.subf %45, %46 : vector<8x16xf32>
    %48 = arith.mulf %47, %47 : vector<8x16xf32>
    %cst_22 = arith.constant 3.906250e-03 : f32
    %49 = vector.broadcast %cst_22 : f32 to vector<8x16xf32>
    %50 = arith.mulf %48, %49 : vector<8x16xf32>
    %51 = vector.shape_cast %50 : vector<8x16xf32> to vector<1x8x16xf32>
    %cst_23 = arith.constant dense<0.000000e+00> : vector<8x16xf32>
    %52 = vector.multi_reduction <add>, %51, %cst_23 [0] : vector<1x8x16xf32> to vector<8x16xf32>
    %c0_24 = arith.constant 0 : index
    %c0_25 = arith.constant 0 : index
    %c0_26 = arith.constant 0 : index
    %53 = vector.load %arg8[%c0_24, %c0_25, %c0_26] : memref<1x8x128xf32, #tpu.memory_space<vmem>>, vector<1x8x16xf32>
    %54 = vector.shape_cast %53 : vector<1x8x16xf32> to vector<8x16xf32>
    %55 = arith.addf %54, %52 : vector<8x16xf32>
    %c0_27 = arith.constant 0 : index
    %c0_28 = arith.constant 0 : index
    %c0_29 = arith.constant 0 : index
    %56 = vector.load %arg8[%c0_27, %c0_28, %c0_29] : memref<1x8x128xf32, #tpu.memory_space<vmem>>, vector<1x8x16xf32>
    %57 = vector.shape_cast %56 : vector<1x8x16xf32> to vector<8x16xf32>
    %58 = vector.shape_cast %55 : vector<8x16xf32> to vector<1x8x16xf32>
    tpu.vector_store %arg8[%c0_27, %c0_28, %c0_29], %58 {strides = array<i32>} : memref<1x8x128xf32, #tpu.memory_space<vmem>>, vector<1x8x16xf32>,
    %c0_30 = arith.constant 0 : index
    %c0_31 = arith.constant 0 : index
    %59 = vector.load %arg6[%c0_30, %c0_31] : memref<8x32xf32, #tpu.memory_space<vmem>>, vector<8x32xf32>
    %c0_32 = arith.constant 0 : index
    %c0_33 = arith.constant 0 : index
    %60 = vector.load %arg7[%c0_32, %c0_33] : memref<8x32xf32, #tpu.memory_space<vmem>>, vector<8x32xf32>
    %61 = arith.subf %59, %60 : vector<8x32xf32>
    %62 = arith.mulf %61, %61 : vector<8x32xf32>
    %cst_34 = arith.constant 0.001953125 : f32
    %63 = vector.broadcast %cst_34 : f32 to vector<8x32xf32>
    %64 = arith.mulf %62, %63 : vector<8x32xf32>
    %65 = vector.shape_cast %64 : vector<8x32xf32> to vector<1x8x32xf32>
    %cst_35 = arith.constant dense<0.000000e+00> : vector<8x32xf32>
    %66 = vector.multi_reduction <add>, %65, %cst_35 [0] : vector<1x8x32xf32> to vector<8x32xf32>
    %c0_36 = arith.constant 0 : index
    %c0_37 = arith.constant 0 : index
    %c0_38 = arith.constant 0 : index
    %67 = vector.load %arg8[%c0_36, %c0_37, %c0_38] : memref<1x8x128xf32, #tpu.memory_space<vmem>>, vector<1x8x32xf32>
    %68 = vector.shape_cast %67 : vector<1x8x32xf32> to vector<8x32xf32>
    %69 = arith.addf %68, %66 : vector<8x32xf32>
    %c0_39 = arith.constant 0 : index
    %c0_40 = arith.constant 0 : index
    %c0_41 = arith.constant 0 : index
    %70 = vector.load %arg8[%c0_39, %c0_40, %c0_41] : memref<1x8x128xf32, #tpu.memory_space<vmem>>, vector<1x8x32xf32>
    %71 = vector.shape_cast %70 : vector<1x8x32xf32> to vector<8x32xf32>
    %72 = vector.shape_cast %69 : vector<8x32xf32> to vector<1x8x32xf32>
    tpu.vector_store %arg8[%c0_39, %c0_40, %c0_41], %72 {strides = array<i32>} : memref<1x8x128xf32, #tpu.memory_space<vmem>>, vector<1x8x32xf32>,
    return
  }
  func.func @transform_0(%arg0: i32, %arg1: i32) -> (i32, i32) {
    %c1_i32 = arith.constant 1 : i32
    %0 = arith.muli %arg0, %c1_i32 : i32
    %1 = arith.addi %0, %arg1 : i32
    %c0_i32 = arith.constant 0 : i32
    %c0_i32_0 = arith.constant 0 : i32
    return %1, %c0_i32 : i32, i32
  }
  func.func @transform_1(%arg0: i32, %arg1: i32) -> (i32, i32) {
    %c1_i32 = arith.constant 1 : i32
    %0 = arith.muli %arg0, %c1_i32 : i32
    %1 = arith.addi %0, %arg1 : i32
    %c0_i32 = arith.constant 0 : i32
    %c0_i32_0 = arith.constant 0 : i32
    return %1, %c0_i32 : i32, i32
  }
  func.func @transform_2(%arg0: i32, %arg1: i32) -> (i32, i32) {
    %c1_i32 = arith.constant 1 : i32
    %0 = arith.muli %arg0, %c1_i32 : i32
    %1 = arith.addi %0, %arg1 : i32
    %c0_i32 = arith.constant 0 : i32
    %c0_i32_0 = arith.constant 0 : i32
    return %1, %c0_i32 : i32, i32
  }
  func.func @transform_3(%arg0: i32, %arg1: i32) -> (i32, i32) {
    %c1_i32 = arith.constant 1 : i32
    %0 = arith.muli %arg0, %c1_i32 : i32
    %1 = arith.addi %0, %arg1 : i32
    %c0_i32 = arith.constant 0 : i32
    %c0_i32_0 = arith.constant 0 : i32
    return %1, %c0_i32 : i32, i32
  }
  func.func @transform_4(%arg0: i32, %arg1: i32) -> (i32, i32) {
    %c1_i32 = arith.constant 1 : i32
    %0 = arith.muli %arg0, %c1_i32 : i32
    %1 = arith.addi %0, %arg1 : i32
    %c0_i32 = arith.constant 0 : i32
    %c0_i32_0 = arith.constant 0 : i32
    return %1, %c0_i32 : i32, i32
  }
  func.func @transform_5(%arg0: i32, %arg1: i32) -> (i32, i32) {
    %c1_i32 = arith.constant 1 : i32
    %0 = arith.muli %arg0, %c1_i32 : i32
    %1 = arith.addi %0, %arg1 : i32
    %c0_i32 = arith.constant 0 : i32
    %c0_i32_0 = arith.constant 0 : i32
    return %1, %c0_i32 : i32, i32
  }
  func.func @transform_6(%arg0: i32, %arg1: i32) -> (i32, i32, i32) {
    %c0_i32 = arith.constant 0 : i32
    %c0_i32_0 = arith.constant 0 : i32
    %c0_i32_1 = arith.constant 0 : i32
    return %arg0, %c0_i32, %c0_i32_0 : i32, i32, i32
  }
}

</mosaic_0001>

<bundles_post_ra>
// kernel: tpu_custom_call.1
= control target key start
LH: loop header
LB: loop body
LE: loop exit
PB: predicated region body
PF: predicated region fallthrough
CT: control target
= control target key end

     0   :  { %11 = vsyncpa [#allocation3], 0  ;;  %s1038_s0 = inlined_call_operand.vmem [shape: f32[16,8], index: 0, kind: input, shape index: {}]   ;;  %s1039_s1 = inlined_call_operand.vmem [shape: f32[16,8], index: 1, kind: input, shape index: {}]   ;;  %s1040_s2 = inlined_call_operand.vmem [shape: f32[16,16], index: 2, kind: input, shape index: {}]   ;;  %s1041_s3 = inlined_call_operand.vmem [shape: f32[16,16], index: 3, kind: input, shape index: {}]   ;;  %s1042_s4 = inlined_call_operand.vmem [shape: f32[16,32], index: 4, kind: input, shape index: {}]   ;;  %s1043_s5 = inlined_call_operand.hbm [shape: f32[16,32], index: 5, kind: input, shape index: {}]   ;;  %s1044_s6 = inlined_call_operand.hbm [shape: f32[2,8,128], index: 6, kind: output, shape index: {}]  }
   0x1   :  { %13 = vsyncpa [#allocation3 + $0x1], 0 }
   0x2   :  { %14 = vsyncpa [#allocation4], 0 }
   0x3   :  { %16 = vsyncpa [#allocation4 + $0x1], 0  ;;  %s859_s21 = smov 0   ;;  %s861_s22 = smov 0  }
   0x4   :  { %s863_s23 = smov 0   ;;  %s865_s24 = smov 0  }
   0x5   :  { %s867_s25 = smov 0   ;;  %s869_s26 = smov 0  }
   0x6 LB: > { %s620_s27 = sadd.s32 4294967295, %s819_s26   ;;  %s621_s28 = sadd.s32 4294967294, %s819_s26   ;;  %s819_s26 = sphi %s869_s26, %s22_s26   ;;  %s815_s25 = sphi %s867_s25, %s1056_s25   ;;  %s811_s24 = sphi %s865_s24, %s1055_s24   ;;  %s807_s23 = sphi %s863_s23, %s1054_s23   ;;  %s803_s22 = sphi %s861_s22, %s1053_s22   ;;  %s799_s21 = sphi %s859_s21, %s1052_s21  }
   0x7   : > { %s34_s29 = sadd.s32 1, %s815_s25  ;;  %s183_s30 = sadd.s32 1, %s807_s23 }
   0x8   : > { %p36_p0 = scmp.ge.s32.totalorder %s34_s29, 2  ;;  %p190_p1 = scmp.ne.s32.totalorder %s807_s23, %s803_s22 }
   0x9   : > { %p191_p2 = scmp.eq.s32.totalorder %s819_s26, 0  ;;  %p196_p3 = scmp.ne.s32.totalorder %s803_s22, %s799_s21 }
   0xa   : > { %s1058_s29 = smov (%p36_p0, %s34_s29), 0  ;;  %p197_p5 = scmp.eq.s32.totalorder %s620_s27, 0 }
   0xb   : > { %p900_p4 = por %p191_p2, %p190_p1  ;;  %s180_s8 = ssub.s32 %s815_s25, %s1058_s29 }
   0xc   : > { %p220_p6 = scmp.eq.s32.totalorder %s620_s27, 1  ;;  %p181_p7 = scmp.eq.s32.totalorder %s180_s8, 0 }
   0xd   : > { %p906_p8 = por %p197_p5, %p196_p3  ;;  %p226_p10 = scmp.eq.s32.totalorder %s621_s28, 1 }
   0xe   : > { %p910_p9 = por %p220_p6, %p190_p1  ;;  %p650_p13 = scmp.lt.s32.totalorder %s819_s26, 2 }
   0xf   : > { %s915_s11 = scalar_select %p181_p7, %s807_s23, %s183_s30  }
  0x10   : > { %p917_p11 = por %p226_p10, %p196_p3  ;;  %s291_s13 = sand.u32 1, %s807_s23  }
  0x11   : > { %s624_s14 = sshll.u32 %s291_s13, 3  ;;  %s625_s15 = sshll.u32 %s815_s25, 7 }
  0x12   : > { %s1048_s12 = scalar_select %p917_p11, 1, 0 }
  0x13   : > { %s301_s18 = scalar_lea.hbm %s1043_s5, %s625_s15  ;;  %s295_s19 = scalar_lea.vmem [#allocation2], %s624_s14 }
  0x14   : > { %s303_s20 = sshll.u32 %s295_s19, 4  ;;  %p930_p0 = pnand %p650_p13, %p900_p4  ;;  %s304_s20 = int_to_ptr.vmem [resolvable:$true] %s303_s20 }
  0x15   : > { %p626_p1 = scmp.ge.s32.totalorder %s819_s26, 1  ;;  %p308_p2 = scmp.lt.s32.totalorder %s819_s26, 3 }
  0x16   : > { %s292_s28 = scalar_lea.sflag [#allocation3], %s291_s13  ;;  %p713_p3 = pneg %p930_p0 }
  0x17   : > { %s724_s30 = scalar_lea.vmem %s304_s20, 128  ;;  %s821_s8 = smov [#allocation2]  }
  0x18   : > { %p725_p5 = scmp.ne.s32.totalorder %s304_s20, %s724_s30  ;;  %s729_s15 = sshll.u32 %s821_s8, 4  ;;  %s730_s15 = int_to_ptr.vmem [resolvable:$false] %s729_s15 }
  0x19   : > { %s731_s14 = scalar_lea.vmem %s730_s15, 256  ;;  %p732_p10 = scmp.lt.s32.totalorder %s304_s20, %s730_s15 }
  0x1a   : > { %p727_p6 = pnand %p725_p5, %p713_p3  ;;  %p733_p12 = scmp.lt.s32.totalorder %s731_s14, %s724_s30 }
  0x1c   : > { %p728_p7 = pneg %p727_p6  ;;  %p734_p4 = por %p733_p12, %p732_p10 }
  0x1e   : > { %p735_p13 = pnand %p734_p4, %p728_p7 }
  0x20   : > { %738 = shalt.err (!%p735_p13)
}
  0x21   : > { %645 = dma.hbm_to_vmem [thread:$0]  (!%p930_p0), %s301_s18, 128, %s304_s20, %s292_s28  }
  0x22   : > { %p309_p11 = pnand %p626_p1, %p308_p2 }
  0x23   : > { %s945_s7 = sand.u32 (!%p309_p11), 1, %s803_s22  }
  0x24   : > { %312 = sbr.rel (%p309_p11) target bundleno = 408 (0x198), region = 44  ;;  %s627_s13 = sshll.u32 (!%p309_p11), %s945_s7, 3 }
  0x25   : > { %s315_s16 = scalar_lea.sflag (!%p309_p11), [#allocation3], %s945_s7  ;;  %s951_s17 = scalar_lea.vmem (!%p309_p11), [#allocation2], %s627_s13 }
  0x29   : > { %790 = dma.done.wait (%p906_p8), %s315_s16, 128  }
  0x2a   : > { %792 = vsyncadd (%p906_p8), %s315_s16, 4294967168  ;;  %p373_p11 = scmp.lt.s32.totalorder %s811_s24, 1  ;;  %vm412_vm0 = vcmask 64512   ;;  %s975_s9 = scalar_lea.vmem [#allocation5], %s627_s13  ;;  %v822_v16 = vmov 0.0   ;;  %v458_v35 = vld [vmem:[%s951_s17] sm:$0xff] }
  0x2b   : > { %407 = vst [vmem:[%s975_s9] sm:$0xff] %v822_v16  ;;  %vm455_vm1 = vcmask 130048   ;;  %s481_s14 = sshll.u32 %s975_s9, 4  ;;  %vm465_vm2 = vcmask 261120   ;;  %s823_s20 = smov [#allocation5]   ;;  %s482_s14 = int_to_ptr.vmem [resolvable:$true] %s481_s14 }
  0x2c   : > { %s374_s18 = scalar_select %p373_p11, %s811_s24, 1 }
  0x2e   : > { %s959_s19 = sshll.u32 %s374_s18, 3  ;;  %s739_s18 = scalar_lea.vmem %s482_s14, 128 }
  0x2f   : > { %s376_s28 = scalar_lea.vmem %s1038_s0, %s959_s19  ;;  %s382_s15 = scalar_lea.vmem %s1039_s1, %s959_s19 }
  0x30   : > { %v408_v0 = vld [vmem:[%s376_s28] sm:$0xff]  ;;  %s388_s13 = scalar_lea.vmem %s1040_s2, %s959_s19  ;;  %s394_s27 = scalar_lea.vmem %s1041_s3, %s959_s19 }
  0x31   : > { %v409_v1 = vmul.f32 10.0, %v408_v0  ;;  %v410_v2 = vld [vmem:[%s382_s15] sm:$0xff]  ;;  %s400_s8 = scalar_lea.vmem %s1042_s4, %s959_s19  ;;  %s635_s15 = sshll.u32 %s811_s24, 7 }
  0x32   : > { %v411_v3 = vmul.f32 10.0, %v410_v2  ;;  %v447_v28 = vld [vmem:[%s388_s13] sm:$0xff]  ;;  %s479_s17 = scalar_lea.hbm %s1044_s6, %s635_s15  ;;  %s468_s13 = scalar_lea.sflag [#allocation4], %s945_s7 }
  0x33   : > { %v413_v4 = vsel %vm412_vm0, %v409_v1, -inf  ;;  %v448_v29 = vld [vmem:[%s394_s27] sm:$0xff]  ;;  %p740_p8 = scmp.ne.s32.totalorder %s482_s14, %s739_s18  ;;  %s743_s27 = sshll.u32 %s823_s20, 4  ;;  %s744_s27 = int_to_ptr.vmem [resolvable:$false] %s743_s27 }
  0x34   : > { %414 = vmax.xlane.f32.xlu0 %v413_v4  ;;  %v422_v5 = vsel %vm412_vm0, %v411_v3, -inf  ;;  %v449_v31 = vsub.f32 %v447_v28, %v448_v29  ;;  %v457_v34 = vld [vmem:[%s400_s8] sm:$0xff]  ;;  %s745_s24 = scalar_lea.vmem %s744_s27, 256  ;;  %p746_p1 = scmp.lt.s32.totalorder %s482_s14, %s744_s27 }
  0x35   : > { %v459_v37 = vsub.f32 %v457_v34, %v458_v35  ;;  %p741_p12 = pnand %p740_p8, %p910_p9  ;;  %p747_p2 = scmp.lt.s32.totalorder %s745_s24, %s739_s18 }
  0x36   : > { %v450_v33 = vmul.f32 %v449_v31, %v449_v31 }
  0x37   : > { %v460_v40 = vmul.f32 %v459_v37, %v459_v37  ;;  %p742_p0 = pneg %p741_p12  ;;  %p748_p3 = por %p747_p2, %p746_p1 }
  0x38   : > { %423 = vmax.xlane.f32.xlu0 %v422_v5  ;;  %v451_v36 = vmul.f32 0.00390625, %v450_v33 }
  0x39   : > { %v461_v41 = vmul.f32 0.001953125, %v460_v40  ;;  %p749_p5 = pnand %p748_p3, %p742_p0 }
  0xbd   : > { %v415_v6 = vpop.xlane.xlu0 %414 }
  0xbe   : > { %v416_v7 = vsub.f32 %v409_v1, %v415_v6 }
  0xc0   : > { %v417_v8 = vmul.f32 1.442695, %v416_v7 }
  0xc1   : > { %v424_v9 = vpop.xlane.xlu0 %423 }
  0xc2   : > { %701 = vpow2.f32 %v417_v8  ;;  %v425_v10 = vsub.f32 %v411_v3, %v424_v9 }
  0xc4   : > { %v426_v11 = vmul.f32 1.442695, %v425_v10 }
  0xc6   : > { %703 = vpow2.f32 %v426_v11 }
  0xcf   : > { %v702_v12 = vpop.eup %701 }
  0xd0   : > { %v419_v13 = vsel %vm412_vm0, %v702_v12, 0.0 }
  0xd1   : > { %420 = vadd.xlane.f32.xlu1 %v419_v13 }
  0xd3   : > { %v704_v14 = vpop.eup %703 }
  0xd4   : > { %v428_v15 = vsel %vm412_vm0, %v704_v14, 0.0 }
  0xd5   : > { %429 = vadd.xlane.f32.xlu1 %v428_v15 }
 0x15a   : > { %v421_v17 = vpop.xlane.xlu1 %420 }
 0x15b   : > { %705 = vlog2.f32 %v421_v17 }
 0x15e   : > { %v430_v18 = vpop.xlane.xlu1 %429 }
 0x15f   : > { %707 = vlog2.f32 %v430_v18 }
 0x160   : > { %709 = vrcp.f32 %v421_v17 }
 0x168   : > { %v706_v19 = vpop.eup %705 }
 0x169   : > { %v435_v20 = vmul.f32 0.6931472, %v706_v19 }
 0x16b   : > { %v436_v24 = vsub.f32 %v416_v7, %v435_v20 }
 0x16c   : > { %v708_v21 = vpop.eup %707 }
 0x16d   : > { %v438_v22 = vmul.f32 0.6931472, %v708_v21  ;;  %v710_v23 = vpop.eup %709 }
 0x16e   : > { %v433_v26 = vmul.f32 %v710_v23, %v702_v12 }
 0x16f   : > { %v439_v25 = vsub.f32 %v425_v10, %v438_v22 }
 0x171   : > { %v440_v27 = vsub.f32 %v436_v24, %v439_v25 }
 0x173   : > { %v441_v30 = vmul.f32 %v440_v27, %v433_v26 }
 0x175   : > { %v442_v32 = vmul.f32 0.0625, %v441_v30 }
 0x177   : > { %446 = vst.msk [vmem:[%s975_s9] sm:$0xff] %vm412_vm0, %v442_v32 }
 0x17e   : > { %v453_v38 = vld [vmem:[%s975_s9] sm:$0xff] }
 0x17f   : > { %v454_v39 = vadd.f32 %v453_v38, %v451_v36 }
 0x181   : > { %456 = vst.msk [vmem:[%s975_s9] sm:$0xff] %vm455_vm1, %v454_v39 }
 0x188   : > { %v463_v42 = vld [vmem:[%s975_s9] sm:$0xff] }
 0x189   : > { %v464_v43 = vadd.f32 %v463_v42, %v461_v41 }
 0x18b   : > { %466 = vst.msk [vmem:[%s975_s9] sm:$0xff] %vm465_vm2, %v464_v43 }
 0x18c   : > { %752 = shalt.err (!%p749_p5)
}
 0x18d   : > { %s753_s28 = scalar_lea.hbm %s479_s17, 128  ;;  %s757_s30 = scalar_lea.hbm %s1044_s6, 256 }
 0x18e   : > { %p754_p6 = scmp.ne.s32.totalorder %s479_s17, %s753_s28  ;;  %p758_p4 = scmp.lt.s32.totalorder %s479_s17, %s1044_s6 }
 0x18f   : > { %p759_p13 = scmp.lt.s32.totalorder %s757_s30, %s753_s28 }
 0x190   : > { %p755_p7 = pnand %p754_p6, %p910_p9 }
 0x191   : > { %p760_p11 = por %p759_p13, %p758_p4 }
 0x192   : > { %p756_p10 = pneg %p755_p7 }
 0x194   : > { %p761_p8 = pnand %p760_p11, %p756_p10 }
 0x196   : > { %764 = shalt.err (!%p761_p8)
}
 0x197   : > { %640 = dma.vmem_to_hbm [thread:$0]  (%p910_p9), %s482_s14, 128, %s479_s17, %s468_s13  }
 0x198 PF: > { %s493_s19 = sand.u32 1, %s799_s21   ;;  %p1050_p12 = scmp.ne.s32.totalorder %s1048_s12, 0 }
 0x199   : > { %p1051_p0 = scmp.ge.s32.totalorder %s819_s26, 2  ;;  %s494_s16 = scalar_lea.sflag [#allocation4], %s493_s19 }
 0x19b   : > { %p647_p1 = pnand %p1051_p0, %p1050_p12 }
 0x19d   : > { %p648_p2 = pneg %p647_p1 }
 0x19f   : > { %794 = dma.done.wait (%p648_p2), %s494_s16, 128  }
 0x1a0   : > { %796 = vsyncadd (%p648_p2), %s494_s16, 4294967168  ;;  %s22_s26 = sadd.s32 1, %s819_s26   ;;  %s1052_s21 = smov %s803_s22 }
 0x1a1   : > { %p19_p3 = scmp.ge.s32.totalorder %s22_s26, 4   ;;  %s1053_s22 = smov %s807_s23 }
 0x1a2   : > { %s1054_s23 = smov %s915_s11  ;;  %s1055_s24 = smov %s815_s25 }
 0x1a3   : > { %s1056_s25 = smov %s1058_s29  ;;  %21 = sbr.rel (!%p19_p3) target bundleno = 6 (0x6), region = 108 }
 0x1a8   :  { %499 = vsyncpa [#allocation3], 1 }
 0x1a9   :  { %501 = vsyncpa [#allocation3 + $0x1], 1 }
 0x1aa   :  { %502 = vsyncpa [#allocation4], 1 }
 0x1ab   :  { %504 = vsyncpa [#allocation4 + $0x1], 1 }

</bundles_post_ra>
